<compile_context>
chip_gen: v7x
topology: tpu7x:2x2x1
jax: 0.10.0
libtpu: 0.0.40
codegen_flags: <defaults>
</compile_context>

<pallas_src>
import jax
import jax.numpy as jnp
from jax.experimental import pallas as pl
from jax.experimental.pallas import tpu as pltpu

_VMEM = pl.BlockSpec(memory_space=pltpu.MemorySpace.VMEM)

GROWTH = 32
BN_SIZE = 4
BLOCK_CONFIG = (6, 12, 24, 16)
INIT_FEATURES = 64
NUM_CLASSES = 1000  # reference module keeps the default densenet121 classifier


# ----------------------------- small helpers ------------------------------

def _round_up(x, m):
    return ((x + m - 1) // m) * m


def _fit(dim_pad, pref):
    # largest tile <= pref (multiple of 128) that divides dim_pad
    t = min(pref, dim_pad)
    while dim_pad % t != 0:
        t -= 128
    return t


# module-level index maps (stable identity -> better dispatch caching)
def _a_map(i, j, k): return (i, k)
def _b_map(i, j, k): return (k, j)
def _sk_map(i, j, k): return (0, k)
def _sn_map(i, j, k): return (0, j)
def _o_map(i, j, k): return (i, j)
def _row_map(i): return (i, 0)


# ----------------------------- Pallas kernels -----------------------------

def _mm_pre_kernel(a_ref, b_ref, s_ref, t_ref, o_ref, acc_ref):
    """out = relu(a*scale + shift) @ b   (BN+ReLU fused as input prologue)."""
    @pl.when(pl.program_id(2) == 0)
    def _():
        acc_ref[...] = jnp.zeros_like(acc_ref)

    a = jnp.maximum(a_ref[...] * s_ref[...] + t_ref[...], 0.0)  # f32 VPU
    acc_ref[...] += jnp.dot(a.astype(jnp.bfloat16), b_ref[...],
                            preferred_element_type=jnp.float32)

    @pl.when(pl.program_id(2) == pl.num_programs(2) - 1)
    def _():
        o_ref[...] = acc_ref[...]


def _mm_post_kernel(a_ref, b_ref, s_ref, t_ref, o_ref, acc_ref):
    """out = relu((a @ b)*scale + shift)  (BN+ReLU fused as output epilogue)."""
    @pl.when(pl.program_id(2) == 0)
    def _():
        acc_ref[...] = jnp.zeros_like(acc_ref)

    acc_ref[...] += jnp.dot(a_ref[...].astype(jnp.bfloat16), b_ref[...],
                            preferred_element_type=jnp.float32)

    @pl.when(pl.program_id(2) == pl.num_programs(2) - 1)
    def _():
        o_ref[...] = jnp.maximum(acc_ref[...] * s_ref[...] + t_ref[...], 0.0)


def _max9_kernel(a0, a1, a2, a3, a4, a5, a6, a7, a8, o_ref):
    r = a0[...]
    for t in (a1, a2, a3, a4, a5, a6, a7, a8):
        r = jnp.maximum(r, t[...])
    o_ref[...] = r


def _mean4_kernel(a0, a1, a2, a3, o_ref):
    o_ref[...] = (a0[...] + a1[...] + a2[...] + a3[...]) * 0.25


def _head_kernel(x_ref, s_ref, t_ref, w_ref, b_ref, o_ref):
    # BN5 + ReLU -> global average pool -> FC (bf16 MXU) -> bias -> softmax
    y = jnp.maximum(x_ref[...] * s_ref[...] + t_ref[...], 0.0)   # (B, HW, C)
    pooled = jnp.mean(y, axis=1)                                  # (B, C)
    logits = jnp.dot(pooled.astype(jnp.bfloat16), w_ref[...],
                     preferred_element_type=jnp.float32) + b_ref[...]
    z = logits - jnp.max(logits, axis=-1, keepdims=True)
    e = jnp.exp(z)
    o_ref[...] = e / jnp.sum(e, axis=-1, keepdims=True)


# ----------------------------- kernel wrappers -----------------------------

def _fused_matmul(a, b, s, t, mode, n_true):
    """Tiled matmul.  a: [M,K] f32 (unpadded), b: [Kpad,Npad] bf16 (padded),
    s/t: BN scale/shift rows — (1,Kpad) for mode='pre', (1,Npad) for 'post'."""
    m, k = a.shape
    kpad, npad = b.shape
    mpad = _round_up(m, 128)
    a = jnp.pad(a, ((0, mpad - m), (0, kpad - k)))

    tm = _fit(mpad, 256)
    tn = _fit(npad, 256)
    tk = _fit(kpad, 512)
    grid = (mpad // tm, npad // tn, kpad // tk)

    if mode == "pre":
        kernel = _mm_pre_kernel
        st_spec = pl.BlockSpec((1, tk), _sk_map)
    else:
        kernel = _mm_post_kernel
        st_spec = pl.BlockSpec((1, tn), _sn_map)

    out = pl.pallas_call(
        kernel,
        grid_spec=pltpu.PrefetchScalarGridSpec(
            num_scalar_prefetch=0,
            grid=grid,
            in_specs=[pl.BlockSpec((tm, tk), _a_map),
                      pl.BlockSpec((tk, tn), _b_map),
                      st_spec, st_spec],
            out_specs=pl.BlockSpec((tm, tn), _o_map),
            scratch_shapes=[pltpu.VMEM((tm, tn), jnp.float32)]),
        out_shape=jax.ShapeDtypeStruct((mpad, npad), jnp.float32),
        compiler_params=pltpu.CompilerParams(
            dimension_semantics=("parallel", "parallel", "arbitrary")),
    )(a, b, s, t)
    return out[:m, :n_true]


def _pallas_pool(taps, op):
    m, c = taps[0].shape
    tm = 256
    mpad = _round_up(m, tm)
    taps = [jnp.pad(tp, ((0, mpad - m), (0, 0))) for tp in taps]
    kern = _max9_kernel if op == "max" else _mean4_kernel
    out = pl.pallas_call(
        kern,
        grid_spec=pltpu.PrefetchScalarGridSpec(
            num_scalar_prefetch=0,
            grid=(mpad // tm,),
            in_specs=[pl.BlockSpec((tm, c), _row_map)] * len(taps),
            out_specs=pl.BlockSpec((tm, c), _row_map)),
        out_shape=jax.ShapeDtypeStruct((mpad, c), jnp.float32),
        compiler_params=pltpu.CompilerParams(dimension_semantics=("parallel",)),
    )(*taps)
    return out[:m]


def _pallas_head(xf, s, t, w, b):
    n, _, _ = xf.shape
    npad = w.shape[1]
    return pl.pallas_call(
        _head_kernel,
        in_specs=[_VMEM] * 5,
        out_specs=_VMEM,
        out_shape=jax.ShapeDtypeStruct((n, npad), jnp.float32),
    )(xf, s, t, w, b)


# ------------------------------ JAX-side glue ------------------------------

def _im2col(xp, kh, kw, stride, ho, wo):
    # TODO(synk): gather the 3x3 windows inside the matmul kernel (tap as a
    # grid reduction axis with shifted index_map) to avoid this kh*kw-times
    # HBM expansion of the patch matrix.
    n, _, _, c = xp.shape
    cols = []
    for di in range(kh):
        for dj in range(kw):
            cols.append(xp[:, di:di + (ho - 1) * stride + 1:stride,
                           dj:dj + (wo - 1) * stride + 1:stride, :])
    return jnp.concatenate(cols, axis=-1).reshape(n * ho * wo, kh * kw * c)


def _pad_nhwc_chan(x, pad, pad_vec):
    # spatial padding with a per-channel constant (the value BN+ReLU maps to 0)
    n, h, w, c = x.shape
    xp = jnp.broadcast_to(pad_vec.reshape(1, 1, 1, c),
                          (n, h + 2 * pad, w + 2 * pad, c))
    return xp.at[:, pad:pad + h, pad:pad + w, :].set(x)


def _max_pool_3x3_s2_p1(x):
    n, h, w, c = x.shape
    xp = jnp.pad(x, ((0, 0), (1, 1), (1, 1), (0, 0)), constant_values=-jnp.inf)
    ho, wo = (h - 1) // 2 + 1, (w - 1) // 2 + 1
    taps = [xp[:, di:di + 2 * (ho - 1) + 1:2, dj:dj + 2 * (wo - 1) + 1:2, :]
            .reshape(n * ho * wo, c) for di in range(3) for dj in range(3)]
    return _pallas_pool(taps, "max").reshape(n, ho, wo, c)


def _avg_pool_2x2_s2(x):
    n, h, w, c = x.shape
    ho, wo = h // 2, w // 2
    taps = [x[:, di:di + 2 * (ho - 1) + 1:2, dj:dj + 2 * (wo - 1) + 1:2, :]
            .reshape(n * ho * wo, c) for di in range(2) for dj in range(2)]
    return _pallas_pool(taps, "mean").reshape(n, ho, wo, c)


# --------------------------- parameters & prep ----------------------------

def _bn_params(c):
    return (jnp.ones((c,), jnp.float32), jnp.zeros((c,), jnp.float32),
            jnp.zeros((c,), jnp.float32), jnp.ones((c,), jnp.float32))


def init_params(key):
    keys = iter(jax.random.split(key, 256))

    def conv_w(o, i, kh, kw):
        std = (2.0 / (i * kh * kw)) ** 0.5
        return std * jax.random.normal(next(keys), (o, i, kh, kw), jnp.float32)

    params = {"conv0": conv_w(INIT_FEATURES, 1, 7, 7),
              "norm0": _bn_params(INIT_FEATURES)}
    ch = INIT_FEATURES
    blocks, trans = [], []
    for bi, nlayers in enumerate(BLOCK_CONFIG):
        layers = []
        for li in range(nlayers):
            in_ch = ch + li * GROWTH
            layers.append({
                "norm1": _bn_params(in_ch),
                "conv1": conv_w(BN_SIZE * GROWTH, in_ch, 1, 1),
                "norm2": _bn_params(BN_SIZE * GROWTH),
                "conv2": conv_w(GROWTH, BN_SIZE * GROWTH, 3, 3),
            })
        blocks.append(layers)
        ch += nlayers * GROWTH
        if bi != len(BLOCK_CONFIG) - 1:
            trans.append({"norm": _bn_params(ch),
                          "conv": conv_w(ch // 2, ch, 1, 1)})
            ch //= 2
    params["blocks"] = blocks
    params["trans"] = trans
    params["norm5"] = _bn_params(ch)
    params["fc_w"] = 0.01 * jax.random.normal(next(keys), (NUM_CLASSES, ch),
                                              jnp.float32)
    params["fc_b"] = jnp.zeros((NUM_CLASSES,), jnp.float32)
    return params


def _bn_fold(bn):
    gamma, beta, mean, var = bn
    scale = gamma / jnp.sqrt(var + 1e-5)
    shift = beta - mean * scale
    return scale, shift


def _prep_wmat(w_oihw):
    o, i, kh, kw = w_oihw.shape
    k = kh * kw * i
    kpad, npad = _round_up(k, 128), _round_up(o, 128)
    wm = jnp.transpose(w_oihw, (2, 3, 1, 0)).reshape(k, o)
    wm = jnp.pad(wm, ((0, kpad - k), (0, npad - o))).astype(jnp.bfloat16)
    return wm, o, i, kh, kw, k, kpad, npad


def _prep_conv_pre(w_oihw, bn):
    wm, o, i, kh, kw, k, kpad, npad = _prep_wmat(w_oihw)
    scale, shift = _bn_fold(bn)
    s_k = jnp.pad(jnp.tile(scale, kh * kw), (0, kpad - k)).reshape(1, kpad)
    t_k = jnp.pad(jnp.tile(shift, kh * kw), (0, kpad - k)).reshape(1, kpad)
    # spatial pad value p with relu(scale*p + shift) == 0 (exact for gamma != 0;
    # degenerate gamma == 0 channels fall back to 0).
    safe = jnp.where(jnp.abs(scale) > 0, scale, 1.0)
    padv = jnp.where(jnp.abs(scale) > 0, -shift / safe, 0.0)
    return {"w": wm, "s": s_k, "t": t_k, "padv": padv, "cout": o}


def _prep_conv_post(w_oihw, bn):
    wm, o, i, kh, kw, k, kpad, npad = _prep_wmat(w_oihw)
    scale, shift = _bn_fold(bn)
    s_n = jnp.pad(scale, (0, npad - o)).reshape(1, npad)
    t_n = jnp.pad(shift, (0, npad - o)).reshape(1, npad)
    return {"w": wm, "s": s_n, "t": t_n, "cout": o}


def prepare_params(params):
    prep = {"conv0": _prep_conv_post(params["conv0"], params["norm0"])}
    prep["blocks"] = [
        [{"conv1": _prep_conv_pre(l["conv1"], l["norm1"]),
          "conv2": _prep_conv_pre(l["conv2"], l["norm2"])} for l in blk]
        for blk in params["blocks"]]
    prep["trans"] = [_prep_conv_pre(t["conv"], t["norm"])
                     for t in params["trans"]]
    s5, t5 = _bn_fold(params["norm5"])
    c = s5.shape[0]
    prep["norm5_s"] = s5.reshape(1, 1, c)
    prep["norm5_t"] = t5.reshape(1, 1, c)
    ncls = params["fc_w"].shape[0]
    npad = _round_up(ncls, 128)
    prep["fc_w"] = jnp.pad(params["fc_w"].T,
                           ((0, 0), (0, npad - ncls))).astype(jnp.bfloat16)
    prep["fc_b"] = jnp.pad(params["fc_b"], (0, npad - ncls),
                           constant_values=-1e30).reshape(1, npad)
    return prep


# ------------------------------ forward pass -------------------------------

def densenet_forward(x_nchw, prep):
    x = jnp.transpose(x_nchw.astype(jnp.float32), (0, 2, 3, 1))  # NCHW->NHWC
    n, h, w, _ = x.shape

    # stem: conv0 (7x7 /2, pad 3) with BN0+ReLU fused as matmul epilogue
    c0 = prep["conv0"]
    xp = jnp.pad(x, ((0, 0), (3, 3), (3, 3), (0, 0)))
    ho, wo = (h + 6 - 7) // 2 + 1, (w + 6 - 7) // 2 + 1
    a = _im2col(xp, 7, 7, 2, ho, wo)
    x = _fused_matmul(a, c0["w"], c0["s"], c0["t"], "post",
                      c0["cout"]).reshape(n, ho, wo, c0["cout"])

    # maxpool 3x3 /2 pad 1
    x = _max_pool_3x3_s2_p1(x)

    # dense blocks + transitions
    ch = c0["cout"]
    for bi, nlayers in enumerate(BLOCK_CONFIG):
        nb, hb, wb, _ = x.shape
        ctot = ch + nlayers * GROWTH
        # resident concat buffer: each layer writes 32 channels at a static offset
        buf = jnp.zeros((nb, hb, wb, ctot), jnp.float32).at[..., :ch].set(x)
        for li in range(nlayers):
            ccur = ch + li * GROWTH
            p1 = prep["blocks"][bi][li]["conv1"]
            p2 = prep["blocks"][bi][li]["conv2"]
            # bottleneck 1x1 conv with fused BN1+ReLU prologue
            a1 = buf[..., :ccur].reshape(nb * hb * wb, ccur)
            y = _fused_matmul(a1, p1["w"], p1["s"], p1["t"], "pre", p1["cout"])
            y = y.reshape(nb, hb, wb, p1["cout"])
            # 3x3 growth conv with fused BN2+ReLU prologue; spatial padding uses
            # the per-channel value that BN+ReLU maps to exactly 0
            yp = _pad_nhwc_chan(y, 1, p2["padv"])
            a2 = _im2col(yp, 3, 3, 1, hb, wb)
            z = _fused_matmul(a2, p2["w"], p2["s"], p2["t"], "pre", p2["cout"])
            buf = buf.at[..., ccur:ccur + GROWTH].set(
                z.reshape(nb, hb, wb, GROWTH))
        x, ch = buf, ctot
        if bi != len(BLOCK_CONFIG) - 1:
            t = prep["trans"][bi]
            a = x.reshape(nb * hb * wb, ch)
            y = _fused_matmul(a, t["w"], t["s"], t["t"], "pre", t["cout"])
            x = _avg_pool_2x2_s2(y.reshape(nb, hb, wb, t["cout"]))
            ch = t["cout"]

    # fused head: BN5+ReLU -> global avg pool -> FC + bias -> softmax
    nb, hb, wb, cb = x.shape
    probs = _pallas_head(x.reshape(nb, hb * wb, cb),
                         prep["norm5_s"], prep["norm5_t"],
                         prep["fc_w"], prep["fc_b"])
    return probs[:, :NUM_CLASSES]


# ---------------------------------- main -----------------------------------

if __name__ == "__main__":
    key = jax.random.PRNGKey(0)
    pkey, xkey = jax.random.split(key)
    params = init_params(pkey)
    prep = prepare_params(params)

    # batch=2, 1 channel, 32x32 spatial (smallest size surviving 5 downsamples)
    x = jax.random.normal(xkey, (2, 1, 32, 32), jnp.float32)

    probs = densenet_forward(x, prep)
    probs = jax.block_until_ready(probs)

    assert probs.shape == (2, NUM_CLASSES)
    assert bool(jnp.all(jnp.isfinite(probs)))
    assert bool(jnp.allclose(jnp.sum(probs, axis=1), 1.0, atol=1e-4))
    print("KERNEL_OK")
</pallas_src>

<mosaic_0001>
module attributes {stable_mosaic.version = 11 : i64} {
  func.func @_mm_post_kernel(%arg0: i32, %arg1: i32, %arg2: i32, %arg3: memref<256x128xf32, #tpu.memory_space<vmem>>, %arg4: memref<128x128xbf16, #tpu.memory_space<vmem>>, %arg5: memref<1x128xf32, #tpu.memory_space<vmem>>, %arg6: memref<1x128xf32, #tpu.memory_space<vmem>>, %arg7: memref<256x128xf32, #tpu.memory_space<vmem>>, %arg8: memref<256x128xf32, #tpu.memory_space<vmem>>) attributes {dimension_semantics = [#tpu.dimension_semantics<parallel>, #tpu.dimension_semantics<parallel>, #tpu.dimension_semantics<arbitrary>], iteration_bounds = array<i64: 2, 1, 1>, scalar_prefetch = 0 : i64, scratch_operands = 1 : i64, tpu.core_type = #tpu.core_type<tc>, window_params = [{transform_indices = @transform_0, window_bounds = array<i64: 256, 128>}, {transform_indices = @transform_1, window_bounds = array<i64: 128, 128>}, {transform_indices = @transform_2, window_bounds = array<i64: 1, 128>}, {transform_indices = @transform_3, window_bounds = array<i64: 1, 128>}, {transform_indices = @transform_4, window_bounds = array<i64: 256, 128>}]} {
    %c0_i32 = arith.constant 0 : i32
    %0 = arith.cmpi eq, %arg2, %c0_i32 : i32
    %1 = arith.extui %0 : i1 to i32
    %c0_i32_0 = arith.constant 0 : i32
    %2 = arith.cmpi ne, %1, %c0_i32_0 : i32
    scf.if %2 {
      %cst_10 = arith.constant 0.000000e+00 : f32
      %13 = vector.broadcast %cst_10 : f32 to vector<256x128xf32>
      %c0_11 = arith.constant 0 : index
      %c0_12 = arith.constant 0 : index
      %14 = vector.load %arg8[%c0_11, %c0_12] : memref<256x128xf32, #tpu.memory_space<vmem>>, vector<256x128xf32>
      tpu.vector_store %arg8[%c0_11, %c0_12], %13 {strides = array<i32>} : memref<256x128xf32, #tpu.memory_space<vmem>>, vector<256x128xf32>,
    } else {
    }
    %c0 = arith.constant 0 : index
    %c0_1 = arith.constant 0 : index
    %3 = vector.load %arg8[%c0, %c0_1] : memref<256x128xf32, #tpu.memory_space<vmem>>, vector<256x128xf32>
    %c0_2 = arith.constant 0 : index
    %c0_3 = arith.constant 0 : index
    %4 = vector.load %arg3[%c0_2, %c0_3] : memref<256x128xf32, #tpu.memory_space<vmem>>, vector<256x128xf32>
    %5 = arith.truncf %4 : vector<256x128xf32> to vector<256x128xbf16>
    %c0_4 = arith.constant 0 : index
    %c0_5 = arith.constant 0 : index
    %6 = vector.load %arg4[%c0_4, %c0_5] : memref<128x128xbf16, #tpu.memory_space<vmem>>, vector<128x128xbf16>
    %cst = arith.constant dense<0.000000e+00> : vector<256x128xf32>
    %7 = tpu.matmul %5, %6, %cst {dimension_numbers = #tpu.dot_dimension_numbers<[1], [0], [0], [1], [0, 0, 1, 1], [], []>} : vector<256x128xbf16>, vector<128x128xbf16>, vector<256x128xf32> -> vector<256x128xf32>
    %8 = arith.addf %3, %7 : vector<256x128xf32>
    %c0_6 = arith.constant 0 : index
    %c0_7 = arith.constant 0 : index
    %9 = vector.load %arg8[%c0_6, %c0_7] : memref<256x128xf32, #tpu.memory_space<vmem>>, vector<256x128xf32>
    tpu.vector_store %arg8[%c0_6, %c0_7], %8 {strides = array<i32>} : memref<256x128xf32, #tpu.memory_space<vmem>>, vector<256x128xf32>,
    %c0_i32_8 = arith.constant 0 : i32
    %10 = arith.cmpi eq, %arg2, %c0_i32_8 : i32
    %11 = arith.extui %10 : i1 to i32
    %c0_i32_9 = arith.constant 0 : i32
    %12 = arith.cmpi ne, %11, %c0_i32_9 : i32
    scf.if %12 {
      %c0_10 = arith.constant 0 : index
      %c0_11 = arith.constant 0 : index
      %13 = vector.load %arg8[%c0_10, %c0_11] : memref<256x128xf32, #tpu.memory_space<vmem>>, vector<256x128xf32>
      %c0_12 = arith.constant 0 : index
      %c0_13 = arith.constant 0 : index
      %14 = vector.load %arg5[%c0_12, %c0_13] : memref<1x128xf32, #tpu.memory_space<vmem>>, vector<1x128xf32>
      %15 = vector.broadcast %14 : vector<1x128xf32> to vector<256x128xf32>
      %16 = arith.mulf %13, %15 : vector<256x128xf32>
      %c0_14 = arith.constant 0 : index
      %c0_15 = arith.constant 0 : index
      %17 = vector.load %arg6[%c0_14, %c0_15] : memref<1x128xf32, #tpu.memory_space<vmem>>, vector<1x128xf32>
      %18 = vector.broadcast %17 : vector<1x128xf32> to vector<256x128xf32>
      %19 = arith.addf %16, %18 : vector<256x128xf32>
      %cst_16 = arith.constant 0.000000e+00 : f32
      %20 = vector.broadcast %cst_16 : f32 to vector<256x128xf32>
      %21 = arith.maximumf %19, %20 : vector<256x128xf32>
      %c0_17 = arith.constant 0 : index
      %c0_18 = arith.constant 0 : index
      %22 = vector.load %arg7[%c0_17, %c0_18] : memref<256x128xf32, #tpu.memory_space<vmem>>, vector<256x128xf32>
      tpu.vector_store %arg7[%c0_17, %c0_18], %21 {strides = array<i32>} : memref<256x128xf32, #tpu.memory_space<vmem>>, vector<256x128xf32>,
    } else {
    }
    return
  }
  func.func @transform_0(%arg0: i32, %arg1: i32, %arg2: i32) -> (i32, i32) {
    %c0_i32 = arith.constant 0 : i32
    return %arg0, %arg2 : i32, i32
  }
  func.func @transform_1(%arg0: i32, %arg1: i32, %arg2: i32) -> (i32, i32) {
    %c0_i32 = arith.constant 0 : i32
    return %arg2, %arg1 : i32, i32
  }
  func.func @transform_2(%arg0: i32, %arg1: i32, %arg2: i32) -> (i32, i32) {
    %c0_i32 = arith.constant 0 : i32
    %c0_i32_0 = arith.constant 0 : i32
    return %c0_i32, %arg1 : i32, i32
  }
  func.func @transform_3(%arg0: i32, %arg1: i32, %arg2: i32) -> (i32, i32) {
    %c0_i32 = arith.constant 0 : i32
    %c0_i32_0 = arith.constant 0 : i32
    return %c0_i32, %arg1 : i32, i32
  }
  func.func @transform_4(%arg0: i32, %arg1: i32, %arg2: i32) -> (i32, i32) {
    %c0_i32 = arith.constant 0 : i32
    return %arg0, %arg1 : i32, i32
  }
}

</mosaic_0001>

<bundles_post_ra>
// kernel: tpu_custom_call.1
= control target key start
LH: loop header
LB: loop body
LE: loop exit
PB: predicated region body
PF: predicated region fallthrough
CT: control target
= control target key end

     0   :  { %9 = vsyncpa [#allocation4], 0  ;;  %s1773_s0 = inlined_call_operand.hbm [shape: f32[512,128], index: 0, kind: input, shape index: {}]   ;;  %s1774_s1 = inlined_call_operand.hbm [shape: bf16[128,128], index: 1, kind: input, shape index: {}]   ;;  %s1775_s2 = inlined_call_operand.vmem [shape: f32[1,128], index: 2, kind: input, shape index: {}]   ;;  %s1776_s3 = inlined_call_operand.vmem [shape: f32[1,128], index: 3, kind: input, shape index: {}]   ;;  %s1777_s4 = inlined_call_operand.hbm [shape: f32[512,128], index: 4, kind: output, shape index: {}]  }
   0x1   :  { %11 = vsyncpa [#allocation4 + $0x1], 0 }
   0x2   :  { %12 = vsyncpa [#allocation7], 0 }
   0x3   :  { %13 = vsyncpa [#allocation5], 0 }
   0x4   :  { %15 = vsyncpa [#allocation5 + $0x1], 0  ;;  %s1407_s15 = smov 0   ;;  %s1409_s16 = smov 0  }
   0x5   :  { %s1411_s17 = smov 0   ;;  %s1413_s18 = smov 0  }
   0x6   :  { %s1415_s19 = smov 0   ;;  %s1417_s20 = smov 0  }
   0x7 LB: > { %s1021_s21 = sadd.s32 4294967295, %s1371_s20   ;;  %s1022_s22 = sadd.s32 4294967294, %s1371_s20   ;;  %s1371_s20 = sphi %s1417_s20, %s21_s20   ;;  %s1367_s19 = sphi %s1415_s19, %s1801_s19   ;;  %s1363_s18 = sphi %s1413_s18, %s1800_s18   ;;  %s1359_s17 = sphi %s1411_s17, %s1799_s17   ;;  %s1355_s16 = sphi %s1409_s16, %s1798_s16   ;;  %s1351_s15 = sphi %s1407_s15, %s1797_s15  }
   0x8   : > { %p62_p0 = scmp.ne.s32.totalorder %s1355_s16, %s1351_s15  ;;  %p1441_p1 = scmp.eq.s32.totalorder %s1021_s21, 0 }
   0x9   : > { %p1445_p2 = scmp.eq.s32.totalorder %s1021_s21, 1  ;;  %p174_p3 = scmp.eq.s32.totalorder %s1022_s22, 1 }
   0xa   : > { %s1782_s23 = scalar_select %p1441_p1, 1, 0 }
   0xb   : > { %s1783_s24 = scalar_select %p1445_p2, 1, 0 }
   0xc   : > { %p1451_p4 = por %p1441_p1, %p62_p0  ;;  %p1023_p5 = scmp.ge.s32.totalorder %s1371_s20, 1 }
   0xd   : > { %p1456_p6 = por %p174_p3, %p62_p0  ;;  %p181_p7 = scmp.lt.s32.totalorder %s1371_s20, 3 }
   0xe   : > { %s1784_s25 = scalar_select %p1451_p4, 1, 0 }
   0xf   : > { %s1785_s26 = scalar_select %p1456_p6, 1, 0 }
  0x10   : > { %p1461_p8 = pnand %p1023_p5, %p181_p7  ;;  %s1373_s28 = smov [#allocation6]  }
  0x11   : > { %s197_s29 = sshll.u32 %s1373_s28, 4  ;;  %s40_s5 = sadd.s32 1, %s1367_s19  ;;  %s198_s29 = int_to_ptr.vmem [resolvable:$true] %s197_s29 }
  0x12   : > { %s1786_s27 = scalar_select %p1461_p8, 1, 0 }
  0x13   : > { %p1148_p9 = pneg %p1461_p8  ;;  %s1227_s8 = scalar_lea.hbm %s1774_s1, 1024 }
  0x14   : > { %p1228_p12 = scmp.ne.s32.totalorder %s1774_s1, %s1227_s8  ;;  %p1234_p5 = scmp.lt.u32.totalorder %s1227_s8, %s1774_s1 }
  0x15   : > { %p1470_p11 = pnand %p1148_p9, %p1441_p1 }
  0x17   : > { %p1229_p13 = pneg %p1470_p11 }
  0x19   : > { %p1230_p0 = pnand %p1229_p13, %p1228_p12 }
  0x1b   : > { %p1231_p3 = pneg %p1230_p0 }
  0x1d   : > { %p1236_p7 = pnand %p1234_p5, %p1231_p3 }
  0x1f   : > { %1239 = shalt.err (!%p1236_p7)
}
  0x20   : > { %s1240_s13 = scalar_lea.vmem %s198_s29, 1024  ;;  %p1248_p1 = scmp.lt.s32.totalorder %s198_s29, %s198_s29 }
  0x21   : > { %p1241_p9 = scmp.ne.s32.totalorder %s198_s29, %s1240_s13  ;;  %p1249_p4 = scmp.lt.s32.totalorder %s1240_s13, %s1240_s13 }
  0x23   : > { %p1243_p10 = pnand %p1241_p9, %p1229_p13  ;;  %p1250_p8 = por %p1249_p4, %p1248_p1 }
  0x25   : > { %p1244_p6 = pneg %p1243_p10 }
  0x27   : > { %p1251_p2 = pnand %p1250_p8, %p1244_p6 }
  0x29   : > { %1254 = shalt.err (!%p1251_p2)
}
  0x2a   : > { %s1374_s14 = smov 64   ;;  %s1375_s21 = smov 4  }
  0x2b   : > { %1151 = dma.hbm_to_vmem [thread:$0]  (!%p1470_p11), %s1774_s1, 1024, %s198_s29, [#allocation7], %s1374_s14, %s1374_s14, %s1375_s21  }
  0x2c   : > { %p42_p1 = scmp.ge.s32.totalorder %s40_s5, 2  ;;  %s49_s6 = sadd.s32 1, %s1359_s17 }
  0x2d   : > { %p56_p2 = scmp.ne.s32.totalorder %s1359_s17, %s1355_s16  ;;  %p57_p4 = scmp.eq.s32.totalorder %s1371_s20, 0 }
  0x2e   : > { %s1803_s5 = smov (%p42_p1, %s40_s5), 0  ;;  %p1789_p8 = scmp.ne.s32.totalorder %s1783_s24, 0 }
  0x2f   : > { %p1497_p6 = por %p57_p4, %p56_p2  ;;  %s44_s30 = ssub.s32 %s1367_s19, %s1803_s5 }
  0x30   : > { %p1503_p10 = por %p1789_p8, %p56_p2  ;;  %p1161_p12 = scmp.lt.s32.totalorder %s1371_s20, 2 }
  0x31   : > { %p47_p11 = scmp.eq.s32.totalorder %s44_s30, 0  ;;  %s223_s29 = sand.u32 1, %s1359_s17  }
  0x32   : > { %s1028_s9 = sshll.u32 %s223_s29, 8  ;;  %s1050_s11 = sshll.u32 %s1367_s19, 12 }
  0x33   : > { %s1512_s10 = scalar_select %p47_p11, %s1359_s17, %s49_s6  }
  0x34   : > { %s1518_s14 = scalar_lea.hbm %s1773_s0, %s1050_s11  ;;  %s227_s24 = scalar_lea.vmem [#allocation3], %s1028_s9 }
  0x35   : > { %s235_s21 = sshll.u32 %s227_s24, 4  ;;  %p1524_p13 = pnand %p1161_p12, %p1497_p6  ;;  %s1520_s21 = int_to_ptr.vmem [resolvable:$true] %s235_s21 }
  0x36   : > { %s1528_s28 = scalar_lea.sflag [#allocation4], %s223_s29  ;;  %s1255_s6 = scalar_lea.hbm %s1518_s14, 4096 }
  0x37   : > { %p1256_p0 = scmp.ne.s32.totalorder %s1518_s14, %s1255_s6  ;;  %p1257_p3 = pneg %p1524_p13 }
  0x38   : > { %s1260_s7 = scalar_lea.hbm %s1773_s0, 8192  ;;  %p1261_p9 = scmp.lt.u32.totalorder %s1518_s14, %s1773_s0 }
  0x39   : > { %p1258_p5 = pnand %p1257_p3, %p1256_p0  ;;  %p1262_p1 = scmp.lt.u32.totalorder %s1260_s7, %s1255_s6 }
  0x3a   : > { %p1264_p4 = scmp.lt.u32.totalorder %s1255_s6, %s1518_s14 }
  0x3b   : > { %p1259_p7 = pneg %p1258_p5  ;;  %p1263_p2 = por %p1262_p1, %p1261_p9 }
  0x3d   : > { %p1265_p6 = por %p1264_p4, %p1263_p2 }
  0x3f   : > { %p1266_p8 = pnand %p1265_p6, %p1259_p7 }
  0x41   : > { %1269 = shalt.err (!%p1266_p8)
}
  0x42   : > { %s1270_s29 = scalar_lea.vmem %s1520_s21, 4096  ;;  %s1376_s13 = smov [#allocation3]  }
  0x43   : > { %p1271_p12 = scmp.ne.s32.totalorder %s1520_s21, %s1270_s29  ;;  %s1275_s24 = sshll.u32 %s1376_s13, 4  ;;  %s1276_s24 = int_to_ptr.vmem [resolvable:$false] %s1275_s24 }
  0x44   : > { %s1277_s30 = scalar_lea.vmem %s1276_s24, 8192  ;;  %p1278_p5 = scmp.lt.s32.totalorder %s1520_s21, %s1276_s24 }
  0x45   : > { %p1273_p11 = pnand %p1271_p12, %p1257_p3  ;;  %p1279_p9 = scmp.lt.s32.totalorder %s1277_s30, %s1270_s29 }
  0x47   : > { %p1274_p0 = pneg %p1273_p11  ;;  %p1280_p1 = por %p1279_p9, %p1278_p5 }
  0x49   : > { %p1281_p2 = pnand %p1280_p1, %p1274_p0 }
  0x4b   : > { %1284 = shalt.err (!%p1281_p2)
}
  0x4c   : > { %s1377_s6 = smov 128   ;;  %s1378_s9 = smov 8  }
  0x4d   : > { %1155 = dma.hbm_to_vmem [thread:$0]  (!%p1524_p13), %s1518_s14, 4096, %s1520_s21, %s1528_s28, %s1377_s6, %s1377_s6, %s1378_s9  }
  0x4e   : > { %p1792_p3 = scmp.ne.s32.totalorder %s1786_s27, 0 }
  0x4f   : > { %s1559_s7 = sand.u32 (!%p1792_p3), 1, %s1355_s16   ;;  %p1793_p7 = scmp.ne.s32.totalorder (!%p1792_p3), %s1784_s25, 0 }
  0x50   : > { %247 = sbr.rel (%p1792_p3) target bundleno = 384 (0x180), region = 36  ;;  %s1032_s11 = sshll.u32 (!%p1792_p3), %s1559_s7, 8 }
  0x51   : > { %s250_s12 = scalar_lea.sflag (!%p1792_p3), [#allocation4], %s1559_s7  ;;  %s1565_s29 = scalar_lea.vmem (!%p1792_p3), [#allocation3], %s1032_s11 }
  0x57   : > { %1338 = dma.done.wait (%p1793_p7), %s250_s12, 4096  }
  0x58   : > { %1340 = vsyncadd (%p1793_p7), %s250_s12, 4294963200  ;;  %p1794_p13 = scmp.ne.s32.totalorder %s1782_s23, 0 }
  0x5a   : > { %1342 = dma.done.wait (%p1794_p13), [#allocation7], 1024  }
  0x5b   : > { %1344 = vsyncadd (%p1794_p13), [#allocation7], 4294966272  ;;  %v1219_v0 = vld [vmem:[#allocation6] sm:$0xff]   ;;  %v1220_v1 = vld [vmem:[#allocation6 + $0x8] sm:$0xff]   ;;  %s1635_s21 = scalar_lea.vmem [#allocation8], %s1032_s11  ;;  %s1051_s22 = sshll.u32 %s1363_s18, 12 }
  0x5c   : > { %1076 = vmatprep.subr.bf16.mxu0 %v1219_v0  ;;  %1124 = vmatprep.subr.bf16.mxu1 %v1219_v0  ;;  %v1221_v2 = vld [vmem:[#allocation6 + $0x10] sm:$0xff]   ;;  %v1222_v3 = vld [vmem:[#allocation6 + $0x18] sm:$0xff]   ;;  %v366_v4 = vld [vmem:[%s1565_s29] sm:$0xff]  ;;  %s895_s28 = sshll.u32 %s1635_s21, 4  ;;  %s1716_s24 = scalar_lea.hbm %s1777_s4, %s1051_s22  ;;  %s1718_s28 = int_to_ptr.vmem [resolvable:$true] %s895_s28 }
  0x5d   : > { %1077 = vmatpush3.bf16.msra.mxu0 %v1219_v0  ;;  %1132 = vmatpush3.bf16.msra.mxu1 %v1219_v0  ;;  %v367_v5 = vld [vmem:[%s1565_s29 + $0x8] sm:$0xff]  ;;  %v382_v6 = vld [vmem:[%s1565_s29 + $0x80] sm:$0xff]  ;;  %v1225_v12 = vld [vmem:[#allocation6 + $0x30] sm:$0xff]   ;;  %s881_s30 = scalar_lea.sflag [#allocation5], %s1559_s7  ;;  %s1285_s6 = scalar_lea.vmem %s1718_s28, 4096 }
  0x5e   : > { %1078 = vmatprep.subr.bf16.mxu0 %v1220_v1  ;;  %1125 = vmatprep.subr.bf16.mxu1 %v1220_v1  ;;  %v398_v7 = vpack.c.bf16 %v367_v5, %v366_v4  ;;  %v383_v8 = vld [vmem:[%s1565_s29 + $0x88] sm:$0xff]  ;;  %v1223_v10 = vld [vmem:[#allocation6 + $0x20] sm:$0xff]   ;;  %v1226_v13 = vld [vmem:[#allocation6 + $0x38] sm:$0xff]   ;;  %p1286_p4 = scmp.ne.s32.totalorder %s1718_s28, %s1285_s6  ;;  %s1379_s9 = smov [#allocation8]  }
  0x5f   : > { %v406_v9 = vpack.c.bf16 %v383_v8, %v382_v6  ;;  %v1224_v11 = vld [vmem:[#allocation6 + $0x28] sm:$0xff]   ;;  %v368_v14 = vld [vmem:[%s1565_s29 + $0x10] sm:$0xff]  ;;  %v369_v15 = vld [vmem:[%s1565_s29 + $0x18] sm:$0xff]  ;;  %s1289_s11 = sshll.u32 %s1379_s9, 4  ;;  %s1290_s11 = int_to_ptr.vmem [resolvable:$false] %s1289_s11 }
  0x60   : > { %1092 = vmatprep.mubr.bf16.mxu0 %v398_v7  ;;  %v384_v16 = vld [vmem:[%s1565_s29 + $0x90] sm:$0xff]  ;;  %v385_v17 = vld [vmem:[%s1565_s29 + $0x98] sm:$0xff]  ;;  %v370_v18 = vld [vmem:[%s1565_s29 + $0x20] sm:$0xff]  ;;  %v399_v22 = vpack.c.bf16 %v369_v15, %v368_v14  ;;  %p1287_p6 = pnand %p1286_p4, %p1503_p10  ;;  %s1291_s12 = scalar_lea.vmem %s1290_s11, 8192 }
  0x61   : > { %1079 = vmatpush3.bf16.msra.mxu0 %v1220_v1  ;;  %1133 = vmatpush3.bf16.msra.mxu1 %v1220_v1  ;;  %v371_v19 = vld [vmem:[%s1565_s29 + $0x28] sm:$0xff]  ;;  %v386_v20 = vld [vmem:[%s1565_s29 + $0xa0] sm:$0xff]  ;;  %v407_v23 = vpack.c.bf16 %v385_v17, %v384_v16  ;;  %v372_v26 = vld [vmem:[%s1565_s29 + $0x30] sm:$0xff]  ;;  %p1292_p12 = scmp.lt.s32.totalorder %s1718_s28, %s1290_s11  ;;  %p1293_p11 = scmp.lt.s32.totalorder %s1291_s12, %s1285_s6 }
  0x62   : > { %1080 = vmatprep.subr.bf16.mxu0 %v1221_v2  ;;  %1126 = vmatprep.subr.bf16.mxu1 %v1221_v2  ;;  %v387_v21 = vld [vmem:[%s1565_s29 + $0xa8] sm:$0xff]  ;;  %v400_v24 = vpack.c.bf16 %v371_v19, %v370_v18  ;;  %v373_v27 = vld [vmem:[%s1565_s29 + $0x38] sm:$0xff]  ;;  %v388_v28 = vld [vmem:[%s1565_s29 + $0xb0] sm:$0xff]  ;;  %p1288_p8 = pneg %p1287_p6 }
  0x63   : > { %1108 = vmatprep.mubr.bf16.mxu1 %v406_v9  ;;  %v408_v25 = vpack.c.bf16 %v387_v21, %v386_v20  ;;  %v389_v29 = vld [vmem:[%s1565_s29 + $0xb8] sm:$0xff]  ;;  %v374_v30 = vld [vmem:[%s1565_s29 + $0x40] sm:$0xff]  ;;  %v375_v31 = vld [vmem:[%s1565_s29 + $0x48] sm:$0xff]  ;;  %v401_v34 = vpack.c.bf16 %v373_v27, %v372_v26  ;;  %p1294_p0 = por %p1293_p11, %p1292_p12 }
  0x64   : > { %v390_v32 = vld [vmem:[%s1565_s29 + $0xc0] sm:$0xff]  ;;  %v391_v33 = vld [vmem:[%s1565_s29 + $0xc8] sm:$0xff]  ;;  %v409_v35 = vpack.c.bf16 %v389_v29, %v388_v28  ;;  %v402_v36 = vpack.c.bf16 %v375_v31, %v374_v30  ;;  %v376_v38 = vld [vmem:[%s1565_s29 + $0x50] sm:$0xff] }
  0x65   : > { %1081 = vmatpush3.bf16.msra.mxu0 %v1221_v2  ;;  %1134 = vmatpush3.bf16.msra.mxu1 %v1221_v2  ;;  %v410_v37 = vpack.c.bf16 %v391_v33, %v390_v32  ;;  %v377_v39 = vld [vmem:[%s1565_s29 + $0x58] sm:$0xff]  ;;  %v392_v40 = vld [vmem:[%s1565_s29 + $0xd0] sm:$0xff]  ;;  %v378_v42 = vld [vmem:[%s1565_s29 + $0x60] sm:$0xff]  ;;  %p1295_p5 = pnand %p1294_p0, %p1288_p8 }
  0x66   : > { %1082 = vmatprep.subr.bf16.mxu0 %v1222_v3  ;;  %1127 = vmatprep.subr.bf16.mxu1 %v1222_v3  ;;  %v393_v41 = vld [vmem:[%s1565_s29 + $0xd8] sm:$0xff]  ;;  %v379_v43 = vld [vmem:[%s1565_s29 + $0x68] sm:$0xff]  ;;  %v394_v44 = vld [vmem:[%s1565_s29 + $0xe0] sm:$0xff]  ;;  %v403_v46 = vpack.c.bf16 %v377_v39, %v376_v38 }
  0x67   : > { %v395_v45 = vld [vmem:[%s1565_s29 + $0xe8] sm:$0xff]  ;;  %v411_v47 = vpack.c.bf16 %v393_v41, %v392_v40  ;;  %v404_v48 = vpack.c.bf16 %v379_v43, %v378_v42  ;;  %v380_v50 = vld [vmem:[%s1565_s29 + $0x70] sm:$0xff]  ;;  %v381_v51 = vld [vmem:[%s1565_s29 + $0x78] sm:$0xff] }
  0x68   : > { %v412_v49 = vpack.c.bf16 %v395_v45, %v394_v44  ;;  %v396_v52 = vld [vmem:[%s1565_s29 + $0xf0] sm:$0xff]  ;;  %v397_v53 = vld [vmem:[%s1565_s29 + $0xf8] sm:$0xff]  ;;  %v405_v54 = vpack.c.bf16 %v381_v51, %v380_v50  ;;  %v1610_v56 = vld [vmem:[%s1775_s2] ss:$0 sm:$0xff] }
  0x69   : > { %1083 = vmatpush3.bf16.msra.mxu0 %v1222_v3  ;;  %1135 = vmatpush3.bf16.msra.mxu1 %v1222_v3  ;;  %v413_v55 = vpack.c.bf16 %v397_v53, %v396_v52  ;;  %v1615_v58 = vld [vmem:[%s1776_s3] ss:$0 sm:$0xff] }
  0x6a   : > { %1084 = vmatprep.subr.bf16.mxu0 %v1223_v10  ;;  %1128 = vmatprep.subr.bf16.mxu1 %v1223_v10 }
  0x6d   : > { %1085 = vmatpush3.bf16.msra.mxu0 %v1223_v10  ;;  %1136 = vmatpush3.bf16.msra.mxu1 %v1223_v10 }
  0x6e   : > { %1086 = vmatprep.subr.bf16.mxu0 %v1224_v11  ;;  %1129 = vmatprep.subr.bf16.mxu1 %v1224_v11 }
  0x71   : > { %1087 = vmatpush3.bf16.msra.mxu0 %v1224_v11  ;;  %1137 = vmatpush3.bf16.msra.mxu1 %v1224_v11 }
  0x72   : > { %1088 = vmatprep.subr.bf16.mxu0 %v1225_v12  ;;  %1130 = vmatprep.subr.bf16.mxu1 %v1225_v12 }
  0x75   : > { %1089 = vmatpush3.bf16.msra.mxu0 %v1225_v12  ;;  %1138 = vmatpush3.bf16.msra.mxu1 %v1225_v12 }
  0x76   : > { %1090 = vmatprep.subr.bf16.mxu0 %v1226_v13  ;;  %1131 = vmatprep.subr.bf16.mxu1 %v1226_v13 }
  0x79   : > { %1091 = vmatpush3.bf16.msra.mxu0 %v1226_v13  ;;  %1139 = vmatpush3.bf16.msra.mxu1 %v1226_v13 }
  0x7c   : > { %1093 = vmatmul.mubr.bf16.vlgmr.msra.gmra.mrb[0].mxu0 %v399_v22  ;;  %1109 = vmatmul.mubr.bf16.vlgmr.msra.gmra.mrb[0].mxu1 %v407_v23 }
  0x7d   : > { %1096 = vmatprep.mubr.bf16.mxu0 %v400_v24  ;;  %1112 = vmatprep.mubr.bf16.mxu1 %v408_v25 }
  0x84   : > { %1097 = vmatmul.mubr.bf16.gmra.mrb[4].mxu0 %v401_v34  ;;  %1113 = vmatmul.mubr.bf16.gmra.mrb[4].mxu1 %v409_v35 }
  0x85   : > { %1100 = vmatprep.mubr.bf16.mxu0 %v402_v36  ;;  %1116 = vmatprep.mubr.bf16.mxu1 %v410_v37 }
  0x8c   : > { %1101 = vmatmul.mubr.bf16.gmra.mrb[8].mxu0 %v403_v46  ;;  %1117 = vmatmul.mubr.bf16.gmra.mrb[8].mxu1 %v411_v47 }
  0x8d   : > { %1104 = vmatprep.mubr.bf16.mxu0 %v404_v48  ;;  %1120 = vmatprep.mubr.bf16.mxu1 %v412_v49 }
  0x94   : > { %1105 = vmatmul.mubr.bf16.gmra.mrb[12].mxu0 %v405_v54  ;;  %1121 = vmatmul.mubr.bf16.gmra.mrb[12].mxu1 %v413_v55 }
 0x14f   : > { %v1094_v57 = vpop.f32.mrb[0].mxu0  ;;  %v1110_v59 = vpop.f32.mrb[0].mxu1 }
 0x150   : > { %v747_v60 = vmul.f32 %v1094_v57, %v1610_v56  ;;  %v763_v61 = vmul.f32 %v1110_v59, %v1610_v56  ;;  %v512_v62 = vpop.f32.mrb[1].mxu0  ;;  %v576_v63 = vpop.f32.mrb[1].mxu1 }
 0x151   : > { %v745_v0 = vmul.f32 %v1610_v56, %v512_v62  ;;  %v761_v1 = vmul.f32 %v1610_v56, %v576_v63  ;;  %v1095_v2 = vpop.f32.mrb[2].mxu0  ;;  %v1111_v3 = vpop.f32.mrb[2].mxu1 }
 0x152   : > { %v786_v4 = vadd.f32 %v1615_v58, %v747_v60  ;;  %v802_v5 = vadd.f32 %v1615_v58, %v763_v61  ;;  %v748_v6 = vmul.f32 %v1095_v2, %v1610_v56  ;;  %v764_v7 = vmul.f32 %v1111_v3, %v1610_v56  ;;  %v515_v8 = vpop.f32.mrb[3].mxu0  ;;  %v579_v9 = vpop.f32.mrb[3].mxu1 }
 0x153   : > { %v784_v10 = vadd.f32 %v1615_v58, %v745_v0  ;;  %v800_v11 = vadd.f32 %v1615_v58, %v761_v1  ;;  %v746_v12 = vmul.f32 %v1610_v56, %v515_v8  ;;  %v762_v13 = vmul.f32 %v1610_v56, %v579_v9 }
 0x154   : > { %v818_v14 = vmax.f32 %v786_v4, 0.0  ;;  %v834_v15 = vmax.f32 %v802_v5, 0.0  ;;  %v787_v16 = vadd.f32 %v1615_v58, %v748_v6  ;;  %v803_v17 = vadd.f32 %v1615_v58, %v764_v7 }
 0x155   : > { %v816_v18 = vmax.f32 %v784_v10, 0.0  ;;  %v832_v19 = vmax.f32 %v800_v11, 0.0  ;;  %v785_v20 = vadd.f32 %v1615_v58, %v746_v12  ;;  %v801_v21 = vadd.f32 %v1615_v58, %v762_v13 }
 0x156   : > { %850 = vst [vmem:[%s1635_s21 + $0x10] sm:$0xff] %v818_v14  ;;  %866 = vst [vmem:[%s1635_s21 + $0x90] sm:$0xff] %v834_v15  ;;  %v819_v22 = vmax.f32 %v787_v16, 0.0  ;;  %v835_v23 = vmax.f32 %v803_v17, 0.0 }
 0x157   : > { %848 = vst [vmem:[%s1635_s21] sm:$0xff] %v816_v18  ;;  %864 = vst [vmem:[%s1635_s21 + $0x80] sm:$0xff] %v832_v19  ;;  %v817_v24 = vmax.f32 %v785_v20, 0.0  ;;  %v833_v25 = vmax.f32 %v801_v21, 0.0  ;;  %v1098_v26 = vpop.f32.mrb[4].mxu0  ;;  %v1114_v27 = vpop.f32.mrb[4].mxu1 }
 0x158   : > { %851 = vst [vmem:[%s1635_s21 + $0x18] sm:$0xff] %v819_v22  ;;  %867 = vst [vmem:[%s1635_s21 + $0x98] sm:$0xff] %v835_v23  ;;  %v751_v28 = vmul.f32 %v1098_v26, %v1610_v56  ;;  %v767_v29 = vmul.f32 %v1114_v27, %v1610_v56  ;;  %v528_v30 = vpop.f32.mrb[5].mxu0  ;;  %v592_v31 = vpop.f32.mrb[5].mxu1 }
 0x159   : > { %849 = vst [vmem:[%s1635_s21 + $0x8] sm:$0xff] %v817_v24  ;;  %865 = vst [vmem:[%s1635_s21 + $0x88] sm:$0xff] %v833_v25  ;;  %v749_v32 = vmul.f32 %v1610_v56, %v528_v30  ;;  %v765_v33 = vmul.f32 %v1610_v56, %v592_v31  ;;  %v1099_v34 = vpop.f32.mrb[6].mxu0  ;;  %v1115_v35 = vpop.f32.mrb[6].mxu1 }
 0x15a   : > { %v790_v36 = vadd.f32 %v1615_v58, %v751_v28  ;;  %v806_v37 = vadd.f32 %v1615_v58, %v767_v29  ;;  %v752_v38 = vmul.f32 %v1099_v34, %v1610_v56  ;;  %v768_v39 = vmul.f32 %v1115_v35, %v1610_v56  ;;  %v531_v40 = vpop.f32.mrb[7].mxu0  ;;  %v595_v41 = vpop.f32.mrb[7].mxu1 }
 0x15b   : > { %v788_v42 = vadd.f32 %v1615_v58, %v749_v32  ;;  %v804_v43 = vadd.f32 %v1615_v58, %v765_v33  ;;  %v750_v44 = vmul.f32 %v1610_v56, %v531_v40  ;;  %v766_v45 = vmul.f32 %v1610_v56, %v595_v41 }
 0x15c   : > { %v822_v46 = vmax.f32 %v790_v36, 0.0  ;;  %v838_v47 = vmax.f32 %v806_v37, 0.0  ;;  %v791_v48 = vadd.f32 %v1615_v58, %v752_v38  ;;  %v807_v49 = vadd.f32 %v1615_v58, %v768_v39 }
 0x15d   : > { %v820_v50 = vmax.f32 %v788_v42, 0.0  ;;  %v836_v51 = vmax.f32 %v804_v43, 0.0  ;;  %v789_v52 = vadd.f32 %v1615_v58, %v750_v44  ;;  %v805_v53 = vadd.f32 %v1615_v58, %v766_v45 }
 0x15e   : > { %854 = vst [vmem:[%s1635_s21 + $0x30] sm:$0xff] %v822_v46  ;;  %870 = vst [vmem:[%s1635_s21 + $0xb0] sm:$0xff] %v838_v47  ;;  %v823_v54 = vmax.f32 %v791_v48, 0.0  ;;  %v839_v55 = vmax.f32 %v807_v49, 0.0 }
 0x15f   : > { %852 = vst [vmem:[%s1635_s21 + $0x20] sm:$0xff] %v820_v50  ;;  %868 = vst [vmem:[%s1635_s21 + $0xa0] sm:$0xff] %v836_v51  ;;  %v821_v57 = vmax.f32 %v789_v52, 0.0  ;;  %v837_v59 = vmax.f32 %v805_v53, 0.0  ;;  %v1102_v60 = vpop.f32.mrb[8].mxu0  ;;  %v1118_v61 = vpop.f32.mrb[8].mxu1 }
 0x160   : > { %855 = vst [vmem:[%s1635_s21 + $0x38] sm:$0xff] %v823_v54  ;;  %871 = vst [vmem:[%s1635_s21 + $0xb8] sm:$0xff] %v839_v55  ;;  %v755_v62 = vmul.f32 %v1102_v60, %v1610_v56  ;;  %v771_v63 = vmul.f32 %v1118_v61, %v1610_v56  ;;  %v544_v0 = vpop.f32.mrb[9].mxu0  ;;  %v608_v1 = vpop.f32.mrb[9].mxu1 }
 0x161   : > { %853 = vst [vmem:[%s1635_s21 + $0x28] sm:$0xff] %v821_v57  ;;  %869 = vst [vmem:[%s1635_s21 + $0xa8] sm:$0xff] %v837_v59  ;;  %v753_v2 = vmul.f32 %v1610_v56, %v544_v0  ;;  %v769_v3 = vmul.f32 %v1610_v56, %v608_v1  ;;  %v1103_v4 = vpop.f32.mrb[10].mxu0  ;;  %v1119_v5 = vpop.f32.mrb[10].mxu1 }
 0x162   : > { %v794_v6 = vadd.f32 %v1615_v58, %v755_v62  ;;  %v810_v7 = vadd.f32 %v1615_v58, %v771_v63  ;;  %v756_v8 = vmul.f32 %v1103_v4, %v1610_v56  ;;  %v772_v9 = vmul.f32 %v1119_v5, %v1610_v56  ;;  %v547_v10 = vpop.f32.mrb[11].mxu0  ;;  %v611_v11 = vpop.f32.mrb[11].mxu1 }
 0x163   : > { %v792_v12 = vadd.f32 %v1615_v58, %v753_v2  ;;  %v808_v13 = vadd.f32 %v1615_v58, %v769_v3  ;;  %v754_v14 = vmul.f32 %v1610_v56, %v547_v10  ;;  %v770_v15 = vmul.f32 %v1610_v56, %v611_v11 }
 0x164   : > { %v826_v16 = vmax.f32 %v794_v6, 0.0  ;;  %v842_v17 = vmax.f32 %v810_v7, 0.0  ;;  %v795_v18 = vadd.f32 %v1615_v58, %v756_v8  ;;  %v811_v19 = vadd.f32 %v1615_v58, %v772_v9 }
 0x165   : > { %v824_v20 = vmax.f32 %v792_v12, 0.0  ;;  %v840_v21 = vmax.f32 %v808_v13, 0.0  ;;  %v793_v22 = vadd.f32 %v1615_v58, %v754_v14  ;;  %v809_v23 = vadd.f32 %v1615_v58, %v770_v15 }
 0x166   : > { %858 = vst [vmem:[%s1635_s21 + $0x50] sm:$0xff] %v826_v16  ;;  %874 = vst [vmem:[%s1635_s21 + $0xd0] sm:$0xff] %v842_v17  ;;  %v827_v24 = vmax.f32 %v795_v18, 0.0  ;;  %v843_v25 = vmax.f32 %v811_v19, 0.0 }
 0x167   : > { %856 = vst [vmem:[%s1635_s21 + $0x40] sm:$0xff] %v824_v20  ;;  %872 = vst [vmem:[%s1635_s21 + $0xc0] sm:$0xff] %v840_v21  ;;  %v825_v26 = vmax.f32 %v793_v22, 0.0  ;;  %v841_v27 = vmax.f32 %v809_v23, 0.0  ;;  %v1106_v28 = vpop.f32.mrb[12].mxu0  ;;  %v1122_v29 = vpop.f32.mrb[12].mxu1 }
 0x168   : > { %859 = vst [vmem:[%s1635_s21 + $0x58] sm:$0xff] %v827_v24  ;;  %875 = vst [vmem:[%s1635_s21 + $0xd8] sm:$0xff] %v843_v25  ;;  %v759_v30 = vmul.f32 %v1106_v28, %v1610_v56  ;;  %v775_v31 = vmul.f32 %v1122_v29, %v1610_v56  ;;  %v560_v32 = vpop.f32.mrb[13].mxu0  ;;  %v624_v33 = vpop.f32.mrb[13].mxu1 }
 0x169   : > { %857 = vst [vmem:[%s1635_s21 + $0x48] sm:$0xff] %v825_v26  ;;  %873 = vst [vmem:[%s1635_s21 + $0xc8] sm:$0xff] %v841_v27  ;;  %v757_v34 = vmul.f32 %v1610_v56, %v560_v32  ;;  %v773_v35 = vmul.f32 %v1610_v56, %v624_v33  ;;  %v1107_v36 = vpop.f32.mrb[14].mxu0  ;;  %v1123_v37 = vpop.f32.mrb[14].mxu1 }
 0x16a   : > { %v798_v38 = vadd.f32 %v1615_v58, %v759_v30  ;;  %v814_v39 = vadd.f32 %v1615_v58, %v775_v31  ;;  %v760_v40 = vmul.f32 %v1107_v36, %v1610_v56  ;;  %v776_v41 = vmul.f32 %v1123_v37, %v1610_v56  ;;  %v563_v42 = vpop.f32.mrb[15].mxu0  ;;  %v627_v43 = vpop.f32.mrb[15].mxu1 }
 0x16b   : > { %v796_v44 = vadd.f32 %v1615_v58, %v757_v34  ;;  %v812_v45 = vadd.f32 %v1615_v58, %v773_v35  ;;  %v758_v46 = vmul.f32 %v1610_v56, %v563_v42  ;;  %v774_v47 = vmul.f32 %v1610_v56, %v627_v43 }
 0x16c   : > { %v830_v48 = vmax.f32 %v798_v38, 0.0  ;;  %v846_v49 = vmax.f32 %v814_v39, 0.0  ;;  %v799_v50 = vadd.f32 %v1615_v58, %v760_v40  ;;  %v815_v51 = vadd.f32 %v1615_v58, %v776_v41 }
 0x16d   : > { %v828_v52 = vmax.f32 %v796_v44, 0.0  ;;  %v844_v53 = vmax.f32 %v812_v45, 0.0  ;;  %v797_v54 = vadd.f32 %v1615_v58, %v758_v46  ;;  %v813_v56 = vadd.f32 %v1615_v58, %v774_v47 }
 0x16e   : > { %862 = vst [vmem:[%s1635_s21 + $0x70] sm:$0xff] %v830_v48  ;;  %878 = vst [vmem:[%s1635_s21 + $0xf0] sm:$0xff] %v846_v49  ;;  %v831_v55 = vmax.f32 %v799_v50, 0.0  ;;  %v847_v57 = vmax.f32 %v815_v51, 0.0 }
 0x16f   : > { %860 = vst [vmem:[%s1635_s21 + $0x60] sm:$0xff] %v828_v52  ;;  %876 = vst [vmem:[%s1635_s21 + $0xe0] sm:$0xff] %v844_v53  ;;  %v829_v59 = vmax.f32 %v797_v54, 0.0  ;;  %v845_v60 = vmax.f32 %v813_v56, 0.0 }
 0x170   : > { %863 = vst [vmem:[%s1635_s21 + $0x78] sm:$0xff] %v831_v55  ;;  %879 = vst [vmem:[%s1635_s21 + $0xf8] sm:$0xff] %v847_v57 }
 0x171   : > { %861 = vst [vmem:[%s1635_s21 + $0x68] sm:$0xff] %v829_v59  ;;  %877 = vst [vmem:[%s1635_s21 + $0xe8] sm:$0xff] %v845_v60 }
 0x172   : > { %1298 = shalt.err (!%p1295_p5)
}
 0x173   : > { %s1299_s29 = scalar_lea.hbm %s1716_s24, 4096  ;;  %s1303_s27 = scalar_lea.hbm %s1777_s4, 8192 }
 0x174   : > { %p1300_p9 = scmp.ne.s32.totalorder %s1716_s24, %s1299_s29  ;;  %p1304_p3 = scmp.lt.u32.totalorder %s1716_s24, %s1777_s4 }
 0x175   : > { %p1305_p7 = scmp.lt.u32.totalorder %s1303_s27, %s1299_s29  ;;  %p1307_p4 = scmp.lt.u32.totalorder %s1299_s29, %s1716_s24 }
 0x176   : > { %p1301_p1 = pnand %p1300_p9, %p1503_p10 }
 0x177   : > { %p1306_p13 = por %p1305_p7, %p1304_p3 }
 0x178   : > { %p1302_p2 = pneg %p1301_p1 }
 0x179   : > { %p1308_p6 = por %p1307_p4, %p1306_p13 }
 0x17b   : > { %p1309_p8 = pnand %p1308_p6, %p1302_p2 }
 0x17d   : > { %1312 = shalt.err (!%p1309_p8)
}
 0x17e   : > { %s1380_s22 = smov 128   ;;  %s1381_s18 = smov 8  }
 0x17f   : > { %1146 = dma.vmem_to_hbm [thread:$0]  (%p1503_p10), %s1718_s28, 4096, %s1716_s24, %s881_s30, %s1380_s22, %s1380_s22, %s1381_s18  }
 0x180 PF: > { %s910_s13 = sand.u32 1, %s1351_s15   ;;  %p1795_p12 = scmp.ne.s32.totalorder %s1785_s26, 0 }
 0x181   : > { %p1796_p11 = scmp.ge.s32.totalorder %s1371_s20, 2  ;;  %s911_s6 = scalar_lea.sflag [#allocation5], %s910_s13 }
 0x183   : > { %p1157_p0 = pnand %p1796_p11, %p1795_p12 }
 0x185   : > { %1346 = dma.done.wait (!%p1157_p0), %s911_s6, 4096  }
 0x186   : > { %1348 = vsyncadd (!%p1157_p0), %s911_s6, 4294963200  ;;  %s21_s20 = sadd.s32 1, %s1371_s20   ;;  %s1797_s15 = smov %s1355_s16 }
 0x187   : > { %p18_p5 = scmp.ge.s32.totalorder %s21_s20, 4   ;;  %s1798_s16 = smov %s1359_s17 }
 0x188   : > { %s1799_s17 = smov %s1512_s10  ;;  %s1800_s18 = smov %s1367_s19 }
 0x189   : > { %s1801_s19 = smov %s1803_s5  ;;  %20 = sbr.rel (!%p18_p5) target bundleno = 7 (0x7), region = 100 }
 0x190   :  { %916 = vsyncpa [#allocation4], 1 }
 0x191   :  { %918 = vsyncpa [#allocation4 + $0x1], 1 }
 0x192   :  { %919 = vsyncpa [#allocation7], 1 }
 0x193   :  { %920 = vsyncpa [#allocation5], 1 }
 0x194   :  { %922 = vsyncpa [#allocation5 + $0x1], 1 }

</bundles_post_ra>
